<compile_context>
chip_gen: v7x
topology: tpu7x:2x2x1
jax: 0.10.0
libtpu: 0.0.40
codegen_flags: <defaults>
</compile_context>

<pallas_src>
import numpy as np
import jax
import jax.numpy as jnp
from jax.experimental import pallas as pl
from jax.experimental.pallas import tpu as pltpu

D_IN = 768          # Linear in_features (wav2vec2 feature dim)
NUM_CHARS = 29      # len(WAV2VEC2_ASR_BASE_960H labels)
C_PAD = 128         # lane-dense padded class dim
NEG_BIG = -1e30     # f32 bias for pad classes -> exp() underflows to exactly 0


def linear_logsoftmax_kernel(x_ref, w_ref, b_ref, out_ref):
    # x_ref: (TM, 768) f32/bf16   w_ref: (768, 128) bf16   b_ref: (1, 128) f32
    logits = jnp.dot(x_ref[...].astype(jnp.bfloat16), w_ref[...],
                     preferred_element_type=jnp.float32) + b_ref[...]
    # log_softmax in f32; pad lanes have logits ~ -1e30 so they never win the
    # max and add exactly 0 to the sum.  Softmax is row-local, so garbage rows
    # in the (masked) ragged edge block cannot affect real rows.
    lmax = jnp.max(logits, axis=-1, keepdims=True)
    p = jnp.exp(logits - lmax)
    lse = jnp.log(jnp.sum(p, axis=-1, keepdims=True)) + lmax
    out_ref[...] = (logits - lse).astype(out_ref.dtype)


def prepare_params(params):
    """Hoist the weight/bias padding + bf16 cast out of the per-call path."""
    w = params["w"].astype(jnp.float32)                          # (768, 29)
    b = params["b"].astype(jnp.float32).reshape(1, NUM_CHARS)    # (1, 29)
    w_p = jnp.pad(w, ((0, 0), (0, C_PAD - NUM_CHARS))).astype(jnp.bfloat16)
    b_p = jnp.pad(b, ((0, 0), (0, C_PAD - NUM_CHARS)), constant_values=NEG_BIG)
    return {"w_p": w_p, "b_p": b_p}


def _row_tile(rows, sublane):
    # Big tiles amortize the ~0.35 µs per-grid-step overhead (cap 2048 ≈ 14 MB
    # double-buffered f32 working set), but never exceed ceil(rows/2) rounded
    # to the sublane multiple, so the grid has >= 2 steps whenever the input
    # permits (both v7x TensorCores get work; neutral on v5e/v6e).
    half = -(-rows // 2)                               # cdiv(rows, 2)
    half_r = -(-half // sublane) * sublane             # round up to sublane
    return int(max(sublane, min(2048, half_r)))


def simple_converter_forward(x, params, *, out_dtype=jnp.float32):
    """x: (..., 768) features (f32 or bf16). Returns log-probs (..., 29)."""
    lead = x.shape[:-1]
    assert x.shape[-1] == D_IN
    rows = int(np.prod(lead)) if lead else 1
    x2 = x.reshape(rows, D_IN)          # no dtype conversion in the wrapper

    if "w_p" in params:
        w_p, b_p = params["w_p"], params["b_p"]
    else:
        prepared = prepare_params(params)
        w_p, b_p = prepared["w_p"], prepared["b_p"]

    sublane = 16 if x2.dtype == jnp.bfloat16 else 8
    tm = _row_tile(rows, sublane)
    n_tiles = pl.cdiv(rows, tm)

    cost = pl.CostEstimate(
        flops=2 * rows * D_IN * C_PAD,
        transcendentals=rows * C_PAD,
        bytes_accessed=(rows * D_IN * x2.dtype.itemsize
                        + rows * C_PAD * jnp.dtype(out_dtype).itemsize
                        + D_IN * C_PAD * 2 + C_PAD * 4),
    )

    out = pl.pallas_call(
        linear_logsoftmax_kernel,
        out_shape=jax.ShapeDtypeStruct((rows, C_PAD), out_dtype),
        grid_spec=pltpu.PrefetchScalarGridSpec(
            num_scalar_prefetch=0,
            grid=(n_tiles,),
            in_specs=[
                pl.BlockSpec((tm, D_IN), lambda i: (i, 0)),
                pl.BlockSpec((D_IN, C_PAD), lambda i: (0, 0)),   # VMEM-resident
                pl.BlockSpec((1, C_PAD), lambda i: (0, 0)),      # VMEM-resident
            ],
            out_specs=pl.BlockSpec((tm, C_PAD), lambda i: (i, 0))),
        compiler_params=pltpu.CompilerParams(
            dimension_semantics=("parallel",),
            vmem_limit_bytes=32 * 1024 * 1024),
        cost_estimate=cost,
    )(x2, w_p, b_p)

    # Lane slice back to 29 classes (pad lanes ~ -1e30; a consumer doing
    # argmax/CTC could equally read the padded slab directly and skip this).
    return out[:, :NUM_CHARS].reshape(*lead, NUM_CHARS)


def init_params(key):
    kw, kb = jax.random.split(key)
    s = 0.02
    return {
        "w": jax.random.normal(kw, (D_IN, NUM_CHARS), jnp.float32) * s,
        "b": jax.random.normal(kb, (NUM_CHARS,), jnp.float32) * s,
    }


def reference_forward(x, p):
    """Pure-JAX reference: log_softmax(x @ W + b) in f32."""
    logits = jnp.einsum("...d,dc->...c", x.astype(jnp.float32), p["w"]) + p["b"]
    return jax.nn.log_softmax(logits, axis=-1)


if __name__ == "__main__":
    # TODO(synk): the torchaudio wav2vec2 feature extractor (self.ƒ) from
    # __init__ is not called in forward() and is not implemented here.
    key = jax.random.PRNGKey(0)
    pkey, xkey = jax.random.split(key)
    params = init_params(pkey)
    prepared = prepare_params(params)   # hoisted once, reused every call

    # B*T = 18 rows is deliberately NOT a multiple of the row tile, exercising
    # the ragged edge-block path (masked edge store, no wrapper pad).
    B, T = 2, 9
    x = jax.random.normal(xkey, (B, T, D_IN), jnp.float32)

    out = jax.block_until_ready(simple_converter_forward(x, prepared))

    assert out.shape == (B, T, NUM_CHARS)
    assert bool(jnp.all(jnp.isfinite(out)))

    ref = reference_forward(x, params)
    # bf16 MXU inputs (f32 accumulate) -> ~1e-2 level drift vs f32 reference.
    np.testing.assert_allclose(np.asarray(out), np.asarray(ref),
                               rtol=5e-2, atol=5e-2)

    print("KERNEL_OK")
</pallas_src>

<mosaic_0001>
module attributes {stable_mosaic.version = 11 : i64} {
  func.func @linear_logsoftmax_kernel(%arg0: i32, %arg1: memref<16x768xf32, #tpu.memory_space<vmem>>, %arg2: memref<768x128xbf16, #tpu.memory_space<vmem>>, %arg3: memref<1x128xf32, #tpu.memory_space<vmem>>, %arg4: memref<16x128xf32, #tpu.memory_space<vmem>>) attributes {dimension_semantics = [#tpu.dimension_semantics<parallel>], iteration_bounds = array<i64: 2>, scalar_prefetch = 0 : i64, scratch_operands = 0 : i64, tpu.core_type = #tpu.core_type<tc>, window_params = [{transform_indices = @transform_0, window_bounds = array<i64: 16, 768>}, {pipeline_mode = #tpu.pipeline_mode<synchronous>, transform_indices = @transform_1, window_bounds = array<i64: 768, 128>}, {pipeline_mode = #tpu.pipeline_mode<synchronous>, transform_indices = @transform_2, window_bounds = array<i64: 1, 128>}, {transform_indices = @transform_3, window_bounds = array<i64: 16, 128>}]} {
    %c0 = arith.constant 0 : index
    %c0_0 = arith.constant 0 : index
    %0 = vector.load %arg1[%c0, %c0_0] : memref<16x768xf32, #tpu.memory_space<vmem>>, vector<16x768xf32>
    %1 = arith.truncf %0 : vector<16x768xf32> to vector<16x768xbf16>
    %c0_1 = arith.constant 0 : index
    %c0_2 = arith.constant 0 : index
    %2 = vector.load %arg2[%c0_1, %c0_2] : memref<768x128xbf16, #tpu.memory_space<vmem>>, vector<768x128xbf16>
    %cst = arith.constant dense<0.000000e+00> : vector<16x128xf32>
    %3 = tpu.matmul %1, %2, %cst {dimension_numbers = #tpu.dot_dimension_numbers<[1], [0], [0], [1], [0, 0, 1, 1], [], []>} : vector<16x768xbf16>, vector<768x128xbf16>, vector<16x128xf32> -> vector<16x128xf32>
    %c0_3 = arith.constant 0 : index
    %c0_4 = arith.constant 0 : index
    %4 = vector.load %arg3[%c0_3, %c0_4] : memref<1x128xf32, #tpu.memory_space<vmem>>, vector<1x128xf32>
    %5 = vector.broadcast %4 : vector<1x128xf32> to vector<16x128xf32>
    %6 = arith.addf %3, %5 : vector<16x128xf32>
    %cst_5 = arith.constant dense<0xFF800000> : vector<16xf32>
    %7 = vector.multi_reduction <maximumf>, %6, %cst_5 [1] : vector<16x128xf32> to vector<16xf32>
    %8 = vector.shape_cast %7 : vector<16xf32> to vector<16x1xf32>
    %9 = vector.broadcast %8 : vector<16x1xf32> to vector<16x128xf32>
    %10 = arith.subf %6, %9 : vector<16x128xf32>
    %11 = math.exp %10 : vector<16x128xf32>
    %cst_6 = arith.constant dense<0.000000e+00> : vector<16xf32>
    %12 = vector.multi_reduction <add>, %11, %cst_6 [1] : vector<16x128xf32> to vector<16xf32>
    %13 = vector.shape_cast %12 : vector<16xf32> to vector<16x1xf32>
    %14 = math.log %13 : vector<16x1xf32>
    %15 = arith.addf %14, %8 : vector<16x1xf32>
    %16 = vector.broadcast %15 : vector<16x1xf32> to vector<16x128xf32>
    %17 = arith.subf %6, %16 : vector<16x128xf32>
    %c0_7 = arith.constant 0 : index
    %c0_8 = arith.constant 0 : index
    %18 = vector.load %arg4[%c0_7, %c0_8] : memref<16x128xf32, #tpu.memory_space<vmem>>, vector<16x128xf32>
    tpu.vector_store %arg4[%c0_7, %c0_8], %17 {strides = array<i32>} : memref<16x128xf32, #tpu.memory_space<vmem>>, vector<16x128xf32>,
    return
  }
  func.func @transform_0(%arg0: i32) -> (i32, i32) {
    %c0_i32 = arith.constant 0 : i32
    %c0_i32_0 = arith.constant 0 : i32
    return %arg0, %c0_i32 : i32, i32
  }
  func.func @transform_1(%arg0: i32) -> (i32, i32) {
    %c0_i32 = arith.constant 0 : i32
    %c0_i32_0 = arith.constant 0 : i32
    %c0_i32_1 = arith.constant 0 : i32
    return %c0_i32, %c0_i32_0 : i32, i32
  }
  func.func @transform_2(%arg0: i32) -> (i32, i32) {
    %c0_i32 = arith.constant 0 : i32
    %c0_i32_0 = arith.constant 0 : i32
    %c0_i32_1 = arith.constant 0 : i32
    return %c0_i32, %c0_i32_0 : i32, i32
  }
  func.func @transform_3(%arg0: i32) -> (i32, i32) {
    %c0_i32 = arith.constant 0 : i32
    %c0_i32_0 = arith.constant 0 : i32
    return %arg0, %c0_i32 : i32, i32
  }
}

</mosaic_0001>

<bundles_post_ra>
// kernel: tpu_custom_call.1
= control target key start
LH: loop header
LB: loop body
LE: loop exit
PB: predicated region body
PF: predicated region fallthrough
CT: control target
= control target key end

     0   :  { %8 = vsyncpa [#allocation3], 0  ;;  %s1524_s0 = inlined_call_operand.hbm [shape: f32[18,768], index: 0, kind: input, shape index: {}]   ;;  %s1525_s1 = inlined_call_operand.hbm [shape: bf16[768,128], index: 1, kind: input, shape index: {}]   ;;  %s1526_s2 = inlined_call_operand.vmem [shape: f32[1,128], index: 2, kind: input, shape index: {}]   ;;  %s1527_s3 = inlined_call_operand.hbm [shape: f32[18,128], index: 3, kind: output, shape index: {}]  }
   0x1   :  { %10 = vsyncpa [#allocation3 + $0x1], 0 }
   0x2   :  { %11 = vsyncpa [#allocation6], 0 }
   0x3   :  { %12 = vsyncpa [#allocation4], 0 }
   0x4   :  { %14 = vsyncpa [#allocation4 + $0x1], 0  ;;  %s1294_s12 = smov 0   ;;  %s1296_s13 = smov 0  }
   0x5   :  { %s1298_s14 = smov 0   ;;  %s1300_s15 = smov 0  }
   0x6 LB: > { %s1315_s16 = sadd.s32 4294967295, %s1263_s15   ;;  %s883_s17 = sadd.s32 4294967294, %s1263_s15   ;;  %s1263_s15 = sphi %s1300_s15, %s1547_s15   ;;  %s1259_s14 = sphi %s1298_s14, %s1546_s14   ;;  %s1255_s13 = sphi %s1296_s13, %s1545_s13   ;;  %s1251_s12 = sphi %s1294_s12, %s1544_s12  }
   0x7   : > { %s1319_s18 = sadd.s32 1, %s1263_s15   ;;  %s27_s19 = sadd.s32 1, %s1259_s14 }
   0x8   : > { %s24_s20 = ssub.s32 %s1263_s15, %s1319_s18  ;;  %p34_p0 = scmp.ne.s32.totalorder %s1259_s14, %s1255_s13 }
   0x9   : > { %p25_p1 = scmp.eq.s32.totalorder %s24_s20, 0  ;;  %p35_p2 = scmp.eq.s32.totalorder %s1263_s15, 0 }
   0xa   : > { %p40_p3 = scmp.ne.s32.totalorder %s1255_s13, %s1251_s12  ;;  %p1528_p4 = scmp.eq.s32.totalorder %s1315_s16, 0 }
   0xb   : > { %s1331_s21 = scalar_select %p25_p1, %s1259_s14, %s27_s19  }
   0xc   : > { %p1333_p5 = por %p35_p2, %p34_p0  ;;  %p1339_p6 = por %p1528_p4, %p40_p3 }
   0xd   : > { %p106_p7 = scmp.eq.s32.totalorder %s1315_s16, 1  ;;  %p112_p8 = scmp.eq.s32.totalorder %s883_s17, 1 }
   0xe   : > { %s1531_s22 = scalar_select %p1333_p5, 1, 0 }
   0xf   : > { %s1532_s23 = scalar_select %p1339_p6, 1, 0 }
  0x10   : > { %p884_p9 = scmp.ge.s32.totalorder %s1263_s15, 1  ;;  %p119_p10 = scmp.lt.s32.totalorder %s1263_s15, 3 }
  0x11   : > { %p1346_p11 = por %p106_p7, %p34_p0  ;;  %p1350_p12 = por %p112_p8, %p40_p3 }
  0x12   : > { %p1354_p13 = pnand %p884_p9, %p119_p10  ;;  %s1265_s27 = smov [#allocation5]  }
  0x13   : > { %s1533_s24 = scalar_select %p1346_p11, 1, 0 }
  0x14   : > { %s1534_s25 = scalar_select %p1350_p12, 1, 0 }
  0x15   : > { %s1535_s26 = scalar_select %p1354_p13, 1, 0 }
  0x16   : > { %p1031_p1 = pneg %p1354_p13  ;;  %s131_s28 = sshll.u32 %s1265_s27, 4  ;;  %s132_s28 = int_to_ptr.vmem [resolvable:$true] %s131_s28 }
  0x17   : > { %s1137_s5 = scalar_lea.hbm %s1525_s1, 6144 }
  0x18   : > { %p1362_p2 = pnand %p1031_p1, %p1528_p4  ;;  %p1138_p0 = scmp.ne.s32.totalorder %s1525_s1, %s1137_s5 }
  0x19   : > { %p1144_p9 = scmp.lt.u32.totalorder %s1137_s5, %s1525_s1 }
  0x1a   : > { %p1139_p3 = pneg %p1362_p2 }
  0x1c   : > { %p1140_p7 = pnand %p1139_p3, %p1138_p0 }
  0x1e   : > { %p1141_p8 = pneg %p1140_p7 }
  0x20   : > { %p1146_p10 = pnand %p1144_p9, %p1141_p8 }
  0x22   : > { %1149 = shalt.err (!%p1146_p10)
}
  0x23   : > { %s1150_s10 = scalar_lea.vmem %s132_s28, 6144  ;;  %p1158_p11 = scmp.lt.s32.totalorder %s132_s28, %s132_s28 }
  0x24   : > { %p1151_p1 = scmp.ne.s32.totalorder %s132_s28, %s1150_s10  ;;  %p1159_p6 = scmp.lt.s32.totalorder %s1150_s10, %s1150_s10 }
  0x26   : > { %p1153_p4 = pnand %p1151_p1, %p1139_p3  ;;  %p1160_p13 = por %p1159_p6, %p1158_p11 }
  0x28   : > { %p1154_p12 = pneg %p1153_p4 }
  0x2a   : > { %p1161_p5 = pnand %p1160_p13, %p1154_p12 }
  0x2c   : > { %1164 = shalt.err (!%p1161_p5)
}
  0x2d   : > { %s1266_s11 = smov 64   ;;  %s1267_s17 = smov 4  }
  0x2e   : > { %1034 = dma.hbm_to_vmem [thread:$0]  (!%p1362_p2), %s1525_s1, 6144, %s132_s28, [#allocation6], %s1266_s11, %s1266_s11, %s1267_s17  }
  0x2f   : > { %p886_p0 = scmp.ge.s32.totalorder %s1263_s15, 2 }
  0x30   : > { %p1537_p4 = scmp.ne.s32.totalorder (!%p886_p0), %s1531_s22, 0 }
  0x31   : > { %144 = sbr.rel (%p886_p0) target bundleno = 92 (0x5c), region = 24 }
  0x38   : > { %147 = sbr.rel (!%p1537_p4) target bundleno = 92 (0x5c), region = 28  ;;  %s148_s27 = sand.u32 (%p1537_p4), 1, %s1259_s14  }
  0x39   : > { %s887_s30 = sshll.u32 (%p1537_p4), %s1263_s15, 1  ;;  %s1022_s4 = smul.u32 (%p1537_p4), 96, %s148_s27 }
  0x3a   : > { %s154_s5 = ssub.s32 (%p1537_p4), 3, %s887_s30  ;;  %s1392_s6 = scalar_lea.sflag (%p1537_p4), [#allocation3], %s148_s27 }
  0x3b   : > { %p155_p5 = scmp.lt.s32.totalorder (%p1537_p4), %s154_s5, 2  ;;  %s152_s7 = scalar_lea.vmem (%p1537_p4), [#allocation2], %s1022_s4 }
  0x3f   : > { %s1549_s5 = smov (!%p155_p5, %s154_s5), 2 }
  0x40   : > { %s1389_s29 = smul.u32 768, %s1549_s5 }
  0x42   : > { %s160_s28 = ssub.s32 1536, %s1389_s29 }
  0x43   : > { %161 = vsyncadd %s1392_s6, %s160_s28  ;;  %p890_p6 = scmp.ne.s32.totalorder %s1389_s29, 0  ;;  %s1023_s22 = smul.u32 1536, %s1263_s15 }
  0x44   : > { %s167_s8 = sshll.u32 %s152_s7, 4  ;;  %s1169_s27 = scalar_lea.hbm %s1524_s0, 2304  ;;  %s1402_s8 = int_to_ptr.vmem [resolvable:$true] %s167_s8 }
  0x45   : > { %s1400_s11 = scalar_lea.hbm %s1524_s0, %s1023_s22 }
  0x46   : > { %s1165_s17 = scalar_lea.hbm %s1400_s11, %s1389_s29  ;;  %p1170_p2 = scmp.lt.u32.totalorder %s1400_s11, %s1524_s0 }
  0x47   : > { %p1166_p11 = scmp.ne.s32.totalorder %s1400_s11, %s1165_s17  ;;  %p1171_p3 = scmp.lt.u32.totalorder %s1169_s27, %s1165_s17 }
  0x48   : > { %p1173_p8 = scmp.lt.u32.totalorder %s1165_s17, %s1400_s11 }
  0x49   : > { %p1167_p12 = pnand %p1166_p11, %p890_p6  ;;  %p1172_p7 = por %p1171_p3, %p1170_p2 }
  0x4b   : > { %p1168_p13 = pneg %p1167_p12  ;;  %p1174_p9 = por %p1173_p8, %p1172_p7 }
  0x4d   : > { %p1175_p10 = pnand %p1174_p9, %p1168_p13 }
  0x4f   : > { %1178 = shalt.err (!%p1175_p10)
}
  0x50   : > { %s1179_s5 = scalar_lea.vmem %s1402_s8, %s1389_s29  ;;  %s1268_s28 = smov [#allocation2]  }
  0x51   : > { %p1180_p1 = scmp.ne.s32.totalorder %s1402_s8, %s1179_s5  ;;  %s1183_s7 = sshll.u32 %s1268_s28, 4  ;;  %s1184_s7 = int_to_ptr.vmem [resolvable:$false] %s1183_s7 }
  0x52   : > { %s1185_s22 = scalar_lea.vmem %s1184_s7, 3072  ;;  %p1186_p11 = scmp.lt.s32.totalorder %s1402_s8, %s1184_s7 }
  0x53   : > { %p1181_p4 = pnand %p1180_p1, %p890_p6  ;;  %p1187_p12 = scmp.lt.s32.totalorder %s1185_s22, %s1179_s5 }
  0x55   : > { %p1182_p5 = pneg %p1181_p4  ;;  %p1188_p2 = por %p1187_p12, %p1186_p11 }
  0x57   : > { %p1189_p3 = pnand %p1188_p2, %p1182_p5 }
  0x59   : > { %1192 = shalt.err (!%p1189_p3)
}
  0x5a   : > { %s1269_s9 = smov 768   ;;  %s1270_s10 = smov 48  }
  0x5b   : > { %173 = dma.hbm_to_vmem [thread:$0]  (%p890_p6), %s1400_s11, %s1389_s29, %s1402_s8, %s1392_s6, %s1269_s9, %s1269_s9, %s1270_s10  }
  0x5c PF: > { %p1538_p13 = scmp.ne.s32.totalorder %s1535_s26, 0 }
  0x5d   : > { %s1432_s17 = sand.u32 (!%p1538_p13), 1, %s1255_s13   ;;  %p1539_p7 = scmp.ne.s32.totalorder (!%p1538_p13), %s1532_s23, 0 }
  0x5e   : > { %179 = sbr.rel (%p1538_p13) target bundleno = 736 (0x2e0), region = 32  ;;  %s182_s20 = scalar_lea.sflag (!%p1538_p13), [#allocation3], %s1432_s17 }
  0x5f   : > { %s1024_s19 = smul.u32 (!%p1538_p13), 96, %s1432_s17 }
  0x61   : > { %s1436_s27 = scalar_lea.vmem (!%p1538_p13), [#allocation2], %s1024_s19 }
  0x65   : > { %1238 = dma.done.wait (%p1539_p7), %s182_s20, 1536  }
  0x66   : > { %1240 = vsyncadd (%p1539_p7), %s182_s20, 4294965760  ;;  %p1540_p6 = scmp.eq.s32.totalorder %s1315_s16, 0 }
  0x68   : > { %1242 = dma.done.wait (%p1540_p6), [#allocation6], 6144   ;;  %p1541_p8 = pmov %p1540_p6 }
  0x69   : > { %v1081_v0 = vld [vmem:[#allocation5 + $0x40] sm:$0xff]   ;;  %v1085_v4 = vld [vmem:[#allocation5 + $0x48] sm:$0xff]   ;;  %v1089_v8 = vld [vmem:[#allocation5 + $0x50] sm:$0xff]   ;;  %s896_s29 = sshll.u32 %s1432_s17, 4  ;;  %s781_s8 = scalar_lea.sflag [#allocation4], %s1432_s17 }
  0x6a   : > { %1244 = vsyncadd (%p1541_p8), [#allocation6], 4294961152  ;;  %v1082_v1 = vld [vmem:[#allocation5] sm:$0xff]   ;;  %956 = vmatprep.subr.bf16.mxu0 %v1081_v0  ;;  %v1086_v5 = vld [vmem:[#allocation5 + $0x8] sm:$0xff]   ;;  %s211_s6 = scalar_lea.vmem [#allocation7], %s896_s29  ;;  %p1542_p9 = scmp.ne.s32.totalorder %s1533_s24, 0 }
  0x6b   : > { %v1083_v2 = vld [vmem:[#allocation5 + $0xc0] sm:$0xff]   ;;  %957 = vmatpush3.bf16.msra.mxu0 %v1082_v1  ;;  %v1087_v6 = vld [vmem:[#allocation5 + $0xc8] sm:$0xff]   ;;  %v1090_v9 = vld [vmem:[#allocation5 + $0x10] sm:$0xff]   ;;  %s947_s11 = sshll.u32 (%p1542_p9), %s1315_s16, 1 }
  0x6c   : > { %v1084_v3 = vld [vmem:[#allocation5 + $0x80] sm:$0xff]   ;;  %978 = vmatprep.subr.bf16.mxu1 %v1083_v2  ;;  %958 = vmatprep.subr.bf16.mxu0 %v1085_v4  ;;  %v1088_v7 = vld [vmem:[#allocation5 + $0x88] sm:$0xff]   ;;  %v1091_v10 = vld [vmem:[#allocation5 + $0xd0] sm:$0xff]   ;;  %s789_s30 = ssub.s32 (%p1542_p9), 3, %s947_s11 }
  0x6d   : > { %979 = vmatpush3.bf16.msra.mxu1 %v1084_v3  ;;  %v1092_v11 = vld [vmem:[#allocation5 + $0x90] sm:$0xff]   ;;  %v1093_v12 = vld [vmem:[#allocation5 + $0x58] sm:$0xff]   ;;  %v1097_v16 = vld [vmem:[#allocation5 + $0x60] sm:$0xff]   ;;  %p790_p10 = scmp.lt.s32.totalorder (%p1542_p9), %s789_s30, 2 }
  0x6e   : > { %980 = vmatprep.subr.bf16.mxu1 %v1087_v6  ;;  %v1094_v13 = vld [vmem:[#allocation5 + $0x18] sm:$0xff]   ;;  %v1098_v17 = vld [vmem:[#allocation5 + $0x20] sm:$0xff]   ;;  %v1101_v20 = vld [vmem:[#allocation5 + $0x68] sm:$0xff]  }
  0x6f   : > { %959 = vmatpush3.bf16.msra.mxu0 %v1086_v5  ;;  %v1095_v14 = vld [vmem:[#allocation5 + $0xd8] sm:$0xff]   ;;  %v1099_v18 = vld [vmem:[#allocation5 + $0xe0] sm:$0xff]   ;;  %v1102_v21 = vld [vmem:[#allocation5 + $0x28] sm:$0xff]  }
  0x70   : > { %960 = vmatprep.subr.bf16.mxu0 %v1089_v8  ;;  %v1096_v15 = vld [vmem:[#allocation5 + $0x98] sm:$0xff]   ;;  %v1100_v19 = vld [vmem:[#allocation5 + $0xa0] sm:$0xff]   ;;  %v1103_v22 = vld [vmem:[#allocation5 + $0xe8] sm:$0xff]  }
  0x71   : > { %981 = vmatpush3.bf16.msra.mxu1 %v1088_v7  ;;  %v1104_v23 = vld [vmem:[#allocation5 + $0xa8] sm:$0xff]   ;;  %v1105_v24 = vld [vmem:[#allocation5 + $0x70] sm:$0xff]   ;;  %v1109_v28 = vld [vmem:[#allocation5 + $0x78] sm:$0xff]  }
  0x72   : > { %982 = vmatprep.subr.bf16.mxu1 %v1091_v10  ;;  %v1106_v25 = vld [vmem:[#allocation5 + $0x30] sm:$0xff]   ;;  %v1110_v29 = vld [vmem:[#allocation5 + $0x38] sm:$0xff]   ;;  %v225_v31 = vld [vmem:[%s1436_s27 + $0x8] sm:$0xff] }
  0x73   : > { %961 = vmatpush3.bf16.msra.mxu0 %v1090_v9  ;;  %v1107_v26 = vld [vmem:[#allocation5 + $0xf0] sm:$0xff]   ;;  %v1111_v30 = vld [vmem:[#allocation5 + $0xf8] sm:$0xff]   ;;  %v224_v35 = vld [vmem:[%s1436_s27] sm:$0xff] }
  0x74   : > { %962 = vmatprep.subr.bf16.mxu0 %v1093_v12  ;;  %v1108_v27 = vld [vmem:[#allocation5 + $0xb0] sm:$0xff]   ;;  %v231_v32 = vld [vmem:[%s1436_s27 + $0x38] sm:$0xff]  ;;  %v1113_v38 = vld [vmem:[#allocation5 + $0x140] sm:$0xff]  }
  0x75   : > { %983 = vmatpush3.bf16.msra.mxu1 %v1092_v11  ;;  %v237_v33 = vpack.c.bf16 %v231_v32, %v225_v31  ;;  %v1112_v34 = vld [vmem:[#allocation5 + $0xb8] sm:$0xff]   ;;  %v230_v36 = vld [vmem:[%s1436_s27 + $0x30] sm:$0xff]  ;;  %v233_v40 = vld [vmem:[%s1436_s27 + $0x48] sm:$0xff] }
  0x76   : > { %984 = vmatprep.subr.bf16.mxu1 %v1095_v14  ;;  %v236_v37 = vpack.c.bf16 %v230_v36, %v224_v35  ;;  %v227_v39 = vld [vmem:[%s1436_s27 + $0x18] sm:$0xff]  ;;  %v1114_v42 = vld [vmem:[#allocation5 + $0x100] sm:$0xff]   ;;  %v226_v43 = vld [vmem:[%s1436_s27 + $0x10] sm:$0xff] }
  0x77   : > { %963 = vmatpush3.bf16.msra.mxu0 %v1094_v13  ;;  %665 = vmatprep.mubr.bf16.mxu0 %v237_v33  ;;  %v239_v41 = vpack.c.bf16 %v233_v40, %v227_v39  ;;  %v232_v44 = vld [vmem:[%s1436_s27 + $0x40] sm:$0xff]  ;;  %v1115_v46 = vld [vmem:[#allocation5 + $0x148] sm:$0xff]   ;;  %v1117_v48 = vld [vmem:[#allocation5 + $0x150] sm:$0xff]  }
  0x78   : > { %964 = vmatprep.subr.bf16.mxu0 %v1097_v16  ;;  %v238_v45 = vpack.c.bf16 %v232_v44, %v226_v43  ;;  %v1116_v47 = vld [vmem:[#allocation5 + $0x108] sm:$0xff]   ;;  %v1118_v49 = vld [vmem:[#allocation5 + $0x110] sm:$0xff]   ;;  %v1119_v50 = vld [vmem:[#allocation5 + $0x158] sm:$0xff]  }
  0x79   : > { %985 = vmatpush3.bf16.msra.mxu1 %v1096_v15  ;;  %706 = vmatprep.mubr.bf16.mxu1 %v239_v41  ;;  %v1120_v51 = vld [vmem:[#allocation5 + $0x118] sm:$0xff]   ;;  %v1121_v52 = vld [vmem:[#allocation5 + $0x160] sm:$0xff]   ;;  %v1123_v54 = vld [vmem:[#allocation5 + $0x168] sm:$0xff]  }
  0x7a   : > { %986 = vmatprep.subr.bf16.mxu1 %v1099_v18  ;;  %v1122_v53 = vld [vmem:[#allocation5 + $0x120] sm:$0xff]   ;;  %v229_v55 = vld [vmem:[%s1436_s27 + $0x28] sm:$0xff]  ;;  %v235_v56 = vld [vmem:[%s1436_s27 + $0x58] sm:$0xff] }
  0x7b   : > { %965 = vmatpush3.bf16.msra.mxu0 %v1098_v17  ;;  %v241_v57 = vpack.c.bf16 %v235_v56, %v229_v55  ;;  %v1124_v58 = vld [vmem:[#allocation5 + $0x128] sm:$0xff]   ;;  %v1125_v59 = vld [vmem:[#allocation5 + $0x170] sm:$0xff]   ;;  %v1127_v61 = vld [vmem:[#allocation5 + $0x178] sm:$0xff]  }
  0x7c   : > { %966 = vmatprep.subr.bf16.mxu0 %v1101_v20  ;;  %v1126_v60 = vld [vmem:[#allocation5 + $0x130] sm:$0xff]   ;;  %v1128_v62 = vld [vmem:[#allocation5 + $0x138] sm:$0xff]   ;;  %v228_v63 = vld [vmem:[%s1436_s27 + $0x20] sm:$0xff] }
  0x7d   : > { %987 = vmatpush3.bf16.msra.mxu1 %v1100_v19  ;;  %v234_v0 = vld [vmem:[%s1436_s27 + $0x50] sm:$0xff]  ;;  %v897_v3 = vld [vmem:[%s1526_s2] ss:$0 sm:$0xff] }
  0x7e   : > { %988 = vmatprep.subr.bf16.mxu1 %v1103_v22  ;;  %v240_v1 = vpack.c.bf16 %v234_v0, %v228_v63 }
  0x7f   : > { %967 = vmatpush3.bf16.msra.mxu0 %v1102_v21 }
  0x80   : > { %968 = vmatprep.subr.bf16.mxu0 %v1105_v24 }
  0x81   : > { %989 = vmatpush3.bf16.msra.mxu1 %v1104_v23 }
  0x82   : > { %990 = vmatprep.subr.bf16.mxu1 %v1107_v26 }
  0x83   : > { %969 = vmatpush3.bf16.msra.mxu0 %v1106_v25 }
  0x84   : > { %970 = vmatprep.subr.bf16.mxu0 %v1109_v28 }
  0x85   : > { %991 = vmatpush3.bf16.msra.mxu1 %v1108_v27 }
  0x86   : > { %992 = vmatprep.subr.bf16.mxu1 %v1111_v30 }
  0x87   : > { %971 = vmatpush3.bf16.msra.mxu0 %v1110_v29 }
  0x88   : > { %1000 = vmatprep.subr.bf16.mxu0 %v1113_v38 }
  0x89   : > { %993 = vmatpush3.bf16.msra.mxu1 %v1112_v34 }
  0x8a   : > { %666 = vmatmul.mubr.bf16.vlgmr.msra.gmra.mrb[0].mxu0 %v236_v37 }
  0x8b   : > { %1001 = vmatpush3.bf16.msra.mxu0 %v1114_v42  ;;  %747 = vmatprep.mubr.bf16.mxu0 %v241_v57 }
  0x8c   : > { %707 = vmatmul.mubr.bf16.vlgmr.msra.gmra.mrb[0].mxu1 %v238_v45  ;;  %1002 = vmatprep.subr.bf16.mxu0 %v1115_v46 }
  0x8f   : > { %1003 = vmatpush3.bf16.msra.mxu0 %v1116_v47 }
  0x90   : > { %1004 = vmatprep.subr.bf16.mxu0 %v1117_v48 }
  0x93   : > { %1005 = vmatpush3.bf16.msra.mxu0 %v1118_v49 }
  0x94   : > { %1006 = vmatprep.subr.bf16.mxu0 %v1119_v50 }
  0x97   : > { %1007 = vmatpush3.bf16.msra.mxu0 %v1120_v51 }
  0x98   : > { %1008 = vmatprep.subr.bf16.mxu0 %v1121_v52 }
  0x9b   : > { %1009 = vmatpush3.bf16.msra.mxu0 %v1122_v53 }
  0x9c   : > { %1010 = vmatprep.subr.bf16.mxu0 %v1123_v54 }
  0x9f   : > { %1011 = vmatpush3.bf16.msra.mxu0 %v1124_v58 }
  0xa0   : > { %1012 = vmatprep.subr.bf16.mxu0 %v1125_v59 }
  0xa3   : > { %1013 = vmatpush3.bf16.msra.mxu0 %v1126_v60 }
  0xa4   : > { %1014 = vmatprep.subr.bf16.mxu0 %v1127_v61 }
  0xa7   : > { %1015 = vmatpush3.bf16.msra.mxu0 %v1128_v62 }
  0xaa   : > { %748 = vmatmul.mubr.bf16.vlgmr.msra.gmra.mrb[4].mxu0 %v240_v1 }
 0x15d   : > { %v972_v2 = vpop.f32.mrb[0].mxu0 }
 0x15e   : > { %v973_v4 = vpop.f32.mrb[1].mxu0 }
 0x15f   : > { %v974_v5 = vadd.f32 %v973_v4, %v972_v2  ;;  %v975_v6 = vpop.f32.mrb[2].mxu0  ;;  %v994_v7 = vpop.f32.mrb[0].mxu1 }
 0x160   : > { %v976_v8 = vpop.f32.mrb[3].mxu0  ;;  %v995_v11 = vpop.f32.mrb[1].mxu1 }
 0x161   : > { %v668_v9 = vadd.f32 %v974_v5, %v897_v3  ;;  %v977_v10 = vadd.f32 %v976_v8, %v975_v6  ;;  %v996_v12 = vadd.f32 %v995_v11, %v994_v7  ;;  %v997_v13 = vpop.f32.mrb[2].mxu1 }
 0x162   : > { %v998_v15 = vpop.f32.mrb[3].mxu1 }
 0x163   : > { %v671_v14 = vadd.f32 %v977_v10, %v897_v3  ;;  %v709_v16 = vadd.f32 %v996_v12, %v668_v9  ;;  %v999_v17 = vadd.f32 %v998_v15, %v997_v13 }
 0x165   : > { %v712_v18 = vadd.f32 %v999_v17, %v671_v14 }
 0x17d   : > { %v1016_v19 = vpop.f32.mrb[4].mxu0 }
 0x17e   : > { %v1017_v20 = vpop.f32.mrb[5].mxu0 }
 0x17f   : > { %v1018_v21 = vadd.f32 %v1017_v20, %v1016_v19  ;;  %v1019_v22 = vpop.f32.mrb[6].mxu0 }
 0x180   : > { %v1020_v23 = vpop.f32.mrb[7].mxu0 }
 0x181   : > { %v750_v24 = vadd.f32 %v1018_v21, %v709_v16  ;;  %v1021_v25 = vadd.f32 %v1020_v23, %v1019_v22 }
 0x183   : > { %v753_v26 = vadd.f32 %v1021_v25, %v712_v18  ;;  %756 = vmax.xlane.f32.xlu0 %v750_v24 }
 0x187   : > { %758 = vmax.xlane.f32.xlu0 %v753_v26 }
 0x210   : > { %v757_v27 = vpop.xlane.xlu0 %756 }
 0x211   : > { %v760_v28 = vsub.f32 %v750_v24, %v757_v27 }
 0x213   : > { %v762_v29 = vmul.f32 1.442695, %v760_v28 }
 0x214   : > { %v759_v30 = vpop.xlane.xlu0 %758 }
 0x215   : > { %v761_v31 = vsub.f32 %v753_v26, %v759_v30  ;;  %1129 = vpow2.f32 %v762_v29 }
 0x217   : > { %v764_v32 = vmul.f32 1.442695, %v761_v31 }
 0x219   : > { %1131 = vpow2.f32 %v764_v32 }
 0x21f   : > { %v1130_v33 = vpop.eup %1129 }
 0x220   : > { %766 = vadd.xlane.f32.xlu1 %v1130_v33 }
 0x223   : > { %v1132_v34 = vpop.eup %1131 }
 0x224   : > { %768 = vadd.xlane.f32.xlu1 %v1132_v34 }
 0x2ad   : > { %v767_v35 = vpop.xlane.xlu1 %766 }
 0x2ae   : > { %1133 = vlog2.f32 %v767_v35 }
 0x2b1   : > { %v769_v36 = vpop.xlane.xlu1 %768 }
 0x2b2   : > { %1135 = vlog2.f32 %v769_v36 }
 0x2b8   : > { %v1134_v37 = vpop.eup %1133 }
 0x2b9   : > { %v771_v38 = vmul.f32 0.6931472, %v1134_v37 }
 0x2bb   : > { %v774_v39 = vadd.f32 %v771_v38, %v757_v27 }
 0x2bc   : > { %v1136_v40 = vpop.eup %1135 }
 0x2bd   : > { %v776_v41 = vsub.f32 %v750_v24, %v774_v39  ;;  %v773_v42 = vmul.f32 0.6931472, %v1136_v40  ;;  %787 = sbr.rel (!%p1542_p9) target bundleno = 736 (0x2e0), region = 44 }
 0x2bf   : > { %778 = vst [vmem:[%s211_s6] sm:$0xff] %v776_v41  ;;  %v775_v43 = vadd.f32 %v773_v42, %v759_v30 }
 0x2c1   : > { %v777_v44 = vsub.f32 %v753_v26, %v775_v43 }
 0x2c3   : > { %779 = vst [vmem:[%s211_s6 + $0x8] sm:$0xff] %v777_v44 }
 0x2c4   : > { %s1551_s30 = smov (!%p790_p10, %s789_s30), 2 }
 0x2c5   : > { %s1466_s4 = sshll.u32 %s1551_s30, 7 }
 0x2c6   : > { %s794_s5 = ssub.s32 256, %s1466_s4 }
 0x2c7   : > { %795 = vsyncadd %s781_s8, %s794_s5  ;;  %p949_p1 = scmp.ne.s32.totalorder %s1466_s4, 0  ;;  %s955_s28 = sshll.u32 %s1315_s16, 8 }
 0x2c8   : > { %s1476_s22 = scalar_lea.hbm %s1527_s3, %s955_s28  ;;  %s800_s9 = sshll.u32 %s211_s6, 4  ;;  %s1478_s9 = int_to_ptr.vmem [resolvable:$true] %s800_s9 }
 0x2c9   : > { %s1193_s10 = scalar_lea.vmem %s1478_s9, %s1466_s4  ;;  %s1271_s19 = smov [#allocation7]  }
 0x2ca   : > { %p1194_p4 = scmp.ne.s32.totalorder %s1478_s9, %s1193_s10  ;;  %s1197_s20 = sshll.u32 %s1271_s19, 4  ;;  %s1198_s20 = int_to_ptr.vmem [resolvable:$false] %s1197_s20 }
 0x2cb   : > { %s1199_s16 = scalar_lea.vmem %s1198_s20, 512  ;;  %p1200_p12 = scmp.lt.s32.totalorder %s1478_s9, %s1198_s20 }
 0x2cc   : > { %p1195_p5 = pnand %p1194_p4, %p949_p1  ;;  %p1201_p2 = scmp.lt.s32.totalorder %s1199_s16, %s1193_s10 }
 0x2ce   : > { %p1196_p11 = pneg %p1195_p5  ;;  %p1202_p3 = por %p1201_p2, %p1200_p12 }
 0x2d0   : > { %p1203_p13 = pnand %p1202_p3, %p1196_p11 }
 0x2d2   : > { %1206 = shalt.err (!%p1203_p13)
}
 0x2d3   : > { %s1207_s27 = scalar_lea.hbm %s1476_s22, %s1466_s4  ;;  %s1211_s29 = scalar_lea.hbm %s1527_s3, 384 }
 0x2d4   : > { %p1208_p7 = scmp.ne.s32.totalorder %s1476_s22, %s1207_s27  ;;  %p1212_p9 = scmp.lt.u32.totalorder %s1476_s22, %s1527_s3 }
 0x2d5   : > { %p1213_p10 = scmp.lt.u32.totalorder %s1211_s29, %s1207_s27  ;;  %p1215_p5 = scmp.lt.u32.totalorder %s1207_s27, %s1476_s22 }
 0x2d6   : > { %p1209_p6 = pnand %p1208_p7, %p949_p1 }
 0x2d7   : > { %p1214_p4 = por %p1213_p10, %p1212_p9 }
 0x2d8   : > { %p1210_p8 = pneg %p1209_p6 }
 0x2d9   : > { %p1216_p11 = por %p1215_p5, %p1214_p4 }
 0x2db   : > { %p1217_p12 = pnand %p1216_p11, %p1210_p8 }
 0x2dd   : > { %1220 = shalt.err (!%p1217_p12)
}
 0x2de   : > { %s1272_s30 = smov 128   ;;  %s1273_s5 = smov 8  }
 0x2df   : > { %806 = dma.vmem_to_hbm [thread:$0]  (%p949_p1), %s1478_s9, %s1466_s4, %s1476_s22, %s781_s8, %s1272_s30, %s1272_s30, %s1273_s5  }
 0x2e0 PF: > { %s815_s28 = sand.u32 1, %s1251_s12   ;;  %p1543_p2 = scmp.ne.s32.totalorder %s1534_s25, 0 }
 0x2e1   : > { %s816_s24 = scalar_lea.sflag [#allocation4], %s815_s28 }
 0x2e2   : > { %p1036_p3 = pnand %p886_p0, %p1543_p2 }
 0x2e4   : > { %1246 = dma.done.wait (!%p1036_p3), %s816_s24, 256  }
 0x2e5   : > { %1248 = vsyncadd (!%p1036_p3), %s816_s24, 4294967040  ;;  %p17_p13 = scmp.ge.s32.totalorder %s1319_s18, 4   ;;  %s1544_s12 = smov %s1255_s13 }
 0x2e6   : > { %s1545_s13 = smov %s1259_s14  ;;  %s1546_s14 = smov %s1331_s21 }
 0x2e7   : > { %s1547_s15 = smov %s1319_s18  ;;  %19 = sbr.rel (!%p17_p13) target bundleno = 6 (0x6), region = 81 }
 0x2ee   :  { %821 = vsyncpa [#allocation3], 1 }
 0x2ef   :  { %823 = vsyncpa [#allocation3 + $0x1], 1 }
 0x2f0   :  { %824 = vsyncpa [#allocation6], 1 }
 0x2f1   :  { %825 = vsyncpa [#allocation4], 1 }
 0x2f2   :  { %827 = vsyncpa [#allocation4 + $0x1], 1 }

</bundles_post_ra>
